<compile_context>
chip_gen: v7x
topology: tpu7x:2x2x1
jax: 0.10.0
libtpu: 0.0.40
codegen_flags: <defaults>
</compile_context>

<pallas_src>
import functools

import jax
import jax.numpy as jnp
from jax.experimental import pallas as pl
from jax.experimental.pallas import tpu as pltpu

LANE = 128            # TPU lane width (last dim)
BLOCK_ROWS = 2048     # rows per grid step in the tiled path (1 MiB f32 / block)
TINY_BYTES = 256 * 1024


def _tpu_config():
    """Generation-aware knobs, inferred from per-core VMEM capacity."""
    vmem_cap = 64 * 1024 * 1024            # conservative fallback
    try:
        vmem_cap = int(pltpu.get_tpu_info().vmem_capacity_bytes)
    except Exception:
        pass
    small_vmem = vmem_cap <= 64 * 1024 * 1024   # v7x-style core (64 MiB, 2 TC/chip)
    ncores = 2 if small_vmem else 1             # pass-1 partial partitions (megacore)
    fused_cutoff = vmem_cap // 16 if small_vmem else vmem_cap // 8
    fused_vmem_limit = 32 * 1024 * 1024 if small_vmem else 100 * 1024 * 1024
    tiled_vmem_limit = int(min(vmem_cap // 2, 64 * 1024 * 1024))
    return ncores, fused_cutoff, fused_vmem_limit, tiled_vmem_limit


# ----------------------------------------------------------------------------
# Fused single-pass kernel (whole slab resident in VMEM).
# ----------------------------------------------------------------------------
def _fused_kernel(x_ref, o_ref, *, wbit, inv_n_elems):
    x = x_ref[...].astype(jnp.float32)
    ax = jnp.abs(x)
    # E = mean(|x|) over the REAL elements (zero padding adds nothing to the sum).
    E = (jnp.sum(ax) * inv_n_elems).reshape(1, 1)
    # max|tanh(x)| == tanh(max|x|): reuse the |x| slab, drop one full-slab abs,
    # and decouple the max reduce from the EUP tanh stream.
    # NOTE: if all weights are exactly zero this divides by zero, same as the
    # PyTorch reference.
    mx = jnp.tanh(jnp.max(ax)).reshape(1, 1)
    t = jnp.tanh(x)
    if wbit == 32:
        q = t * (E / mx)                    # == (t / mx) * E
    else:
        n = float(2 ** wbit - 1)
        a = n / (2.0 * mx)                  # (1,1): single divide
        c = (2.0 / n) * E                   # (1,1)
        # == (2*round((t/2/mx + 0.5)*n)/n - 1) * E, kept VPU-only per element.
        q = jnp.round(t * a + (0.5 * n)) * c - E
    o_ref[...] = q.astype(o_ref.dtype)


# ----------------------------------------------------------------------------
# Tiled pass 1: streaming reduction into (8,128) vector accumulators
# (one partial per partition; outputs act as resident accumulators).
# The ragged last block (rows not a multiple of BLOCK_ROWS) is masked in-kernel,
# so no full-tensor pad copy is needed.
# ----------------------------------------------------------------------------
def _reduce_kernel(x_ref, sum_ref, max_ref, *, block_rows, rows_total,
                   n_blocks, bpc, ragged):
    i = pl.program_id(0)            # partition (megacore) axis
    j = pl.program_id(1)            # blocks-per-partition axis (reduction)
    lb = i * bpc + j                # linear block index (may overshoot n_blocks)

    @pl.when(j == 0)
    def _():
        sum_ref[...] = jnp.zeros_like(sum_ref)
        max_ref[...] = jnp.zeros_like(max_ref)   # |x| >= 0, so 0 is a safe identity

    def _accum(mask_rows):
        ax = jnp.abs(x_ref[...].astype(jnp.float32))
        if mask_rows:
            # Zero lanes past the real array end (OOB reads of the ragged last
            # block contain garbage).  Only traced for the last block.
            row = (jax.lax.broadcasted_iota(jnp.int32, ax.shape, 0)
                   + lb * block_rows)
            ax = jnp.where(row < rows_total, ax, 0.0)
        # Fold the (block_rows,128) tile to (8,128) via major-axis adds/maxes
        # (VPU); the single cross-lane reduce happens once, in XLA, on the tiny
        # partials.
        axr = ax.reshape(block_rows // 8, 8, LANE)
        sum_ref[...] = sum_ref[...] + jnp.sum(axr, axis=0)
        max_ref[...] = jnp.maximum(max_ref[...], jnp.max(axr, axis=0))

    if ragged:
        @pl.when(lb == n_blocks - 1)     # the only block that can be ragged
        def _():
            _accum(mask_rows=True)

        @pl.when(lb < n_blocks - 1)      # full blocks: no per-element masking
        def _():
            _accum(mask_rows=False)
        # lb >= n_blocks (padding slots of the partition split): skipped.
    else:
        @pl.when(lb < n_blocks)
        def _():
            _accum(mask_rows=False)


# ----------------------------------------------------------------------------
# Tiled pass 2: elementwise quantization with folded scalars from SMEM.
# Ragged last block: OOB reads are garbage but their writes are dropped.
# ----------------------------------------------------------------------------
def _quant_kernel(coef_ref, x_ref, o_ref, *, wbit):
    t = jnp.tanh(x_ref[...].astype(jnp.float32))
    if wbit == 32:
        q = t * coef_ref[0]                                   # coef0 = E / mx
    else:
        # q = round(tanh(x)*a + b) * c + d
        #   (a = n/(2 mx), b = n/2, c = 2E/n, d = -E) -- minimal per-element VALU work.
        q = jnp.round(t * coef_ref[0] + coef_ref[1]) * coef_ref[2] + coef_ref[3]
    o_ref[...] = q.astype(o_ref.dtype)


# ----------------------------------------------------------------------------
# Plain-JAX reference reproducing the PyTorch forward (also the tiny-path impl).
# ----------------------------------------------------------------------------
def _reference_jax(x, w_bit):
    xf = x.astype(jnp.float32)
    E = jnp.mean(jnp.abs(xf))
    w = jnp.tanh(xf)
    if w_bit == 32:
        w = w / jnp.max(jnp.abs(w))
        return (w * E).astype(x.dtype)
    n = float(2 ** w_bit - 1)
    w = w / 2.0 / jnp.max(jnp.abs(w)) + 0.5
    return ((2.0 * (jnp.round(w * n) / n) - 1.0) * E).astype(x.dtype)


# ----------------------------------------------------------------------------
# Wrapper.
# ----------------------------------------------------------------------------
def weight_quantize_fn_pallas(x, w_bit, *, force_path=None):
    """Forward pass of weight_quantize_fn(w_bit) on tensor x."""
    assert w_bit <= 8 or w_bit == 32

    orig_shape = x.shape
    orig_dtype = x.dtype
    n_elems = x.size

    ncores, fused_cutoff, fused_vmem, tiled_vmem = _tpu_config()

    # Tiny-tensor fast path: skip Pallas entirely (launch + any pad copy would
    # dominate; XLA's fused elementwise path is already at the roofline).
    if force_path is None and n_elems * x.dtype.itemsize < TINY_BYTES:
        return _reference_jax(x, w_bit)

    use_fused = (n_elems * 4) <= fused_cutoff   # f32 working-set gate
    if force_path == "fused":
        use_fused = True
    elif force_path == "tiled":
        use_fused = False

    # Present a lane-dense (rows, 128) slab.  Padding granularity is only 128
    # elements (512 B f32); most real weights are already aligned -> no copy.
    pad = (-n_elems) % LANE
    rows0 = (n_elems + pad) // LANE
    if (not use_fused) and rows0 < BLOCK_ROWS and rows0 % 8 != 0:
        # Sub-block tiled case (only reachable via force_path on small inputs):
        # round rows to a sublane multiple so the (r//8, 8, 128) fold is valid.
        pad = ((rows0 + 7) // 8) * 8 * LANE - n_elems
    flat = x.reshape(-1)
    if pad:    # only materialize a pad copy when actually needed
        flat = jnp.pad(flat, (0, pad))
    x2 = flat.reshape(-1, LANE)
    rows = x2.shape[0]

    if use_fused:
        # TODO(synk): for slabs near the fused cutoff, stream the slab with
        # pltpu.emit_pipeline to overlap the in/out DMA with compute.
        out2 = pl.pallas_call(
            functools.partial(_fused_kernel, wbit=w_bit,
                              inv_n_elems=1.0 / float(n_elems)),
            out_shape=jax.ShapeDtypeStruct(x2.shape, orig_dtype),
            compiler_params=pltpu.CompilerParams(vmem_limit_bytes=fused_vmem),
        )(x2)
    else:
        block_rows = min(BLOCK_ROWS, rows)          # full-dim block if tiny
        n_blocks = pl.cdiv(rows, block_rows)        # ragged last block allowed
        bpc = pl.cdiv(n_blocks, ncores)             # blocks per partition
        ragged = (rows % block_rows) != 0

        # Clamp the block index for padding slots of the partition split; those
        # slots re-read an already-valid block but skip accumulation in-kernel.
        in_map = lambda i, j, bpc=bpc, nb=n_blocks: (
            jnp.minimum(i * bpc + j, nb - 1), 0)

        # Pass 1: streaming sum(|x|) / max(|x|) partials (no tanh needed).
        # dimension_semantics: partition axis "parallel" (sharded across
        # TensorCores on 2-TC chips), reduction axis "arbitrary".
        sum_parts, max_parts = pl.pallas_call(
            functools.partial(_reduce_kernel, block_rows=block_rows,
                              rows_total=rows, n_blocks=n_blocks, bpc=bpc,
                              ragged=ragged),
            out_shape=(
                jax.ShapeDtypeStruct((ncores * 8, LANE), jnp.float32),
                jax.ShapeDtypeStruct((ncores * 8, LANE), jnp.float32),
            ),
            grid=(ncores, bpc),
            in_specs=[pl.BlockSpec((block_rows, LANE), in_map)],
            out_specs=(
                pl.BlockSpec((8, LANE), lambda i, j: (i, 0)),
                pl.BlockSpec((8, LANE), lambda i, j: (i, 0)),
            ),
            compiler_params=pltpu.CompilerParams(
                dimension_semantics=("parallel", "arbitrary"),
                vmem_limit_bytes=tiled_vmem),
        )(x2)

        # Tiny glue math in plain JAX (runs once, not per element).
        E = jnp.sum(sum_parts) / jnp.float32(n_elems)
        mx = jnp.tanh(jnp.max(max_parts))      # max|tanh(x)| == tanh(max|x|)
        if w_bit == 32:
            coef = jnp.stack([E / mx, jnp.float32(0.0),
                              jnp.float32(0.0), jnp.float32(0.0)])
        else:
            n = jnp.float32(2 ** w_bit - 1)
            coef = jnp.stack([n / (2.0 * mx), 0.5 * n, 2.0 * E / n, -E])
        coef = coef.astype(jnp.float32)

        # Pass 2: elementwise quantization; scalars ride in SMEM.  Ragged last
        # block needs no masking (OOB writes are dropped).
        out2 = pl.pallas_call(
            functools.partial(_quant_kernel, wbit=w_bit),
            out_shape=jax.ShapeDtypeStruct(x2.shape, orig_dtype),
            grid=(n_blocks,),
            in_specs=[
                pl.BlockSpec(memory_space=pltpu.MemorySpace.SMEM),
                pl.BlockSpec((block_rows, LANE), lambda b: (b, 0)),
            ],
            out_specs=pl.BlockSpec((block_rows, LANE), lambda b: (b, 0)),
            compiler_params=pltpu.CompilerParams(
                dimension_semantics=("parallel",),
                vmem_limit_bytes=tiled_vmem),
        )(coef, x2)

    out = out2.reshape(-1)
    if pad:
        out = out[:n_elems]
    return out.reshape(orig_shape)


if __name__ == "__main__":
    key = jax.random.PRNGKey(0)

    # --- small OIHW conv weight: strict check on all paths --------------------
    x_small = jax.random.normal(key, (8, 4, 3, 3), dtype=jnp.float32) * 0.5
    for w_bit in (4, 32):
        ref = _reference_jax(x_small, w_bit)
        # default dispatch (tiny fast path at this size)
        out = jax.block_until_ready(weight_quantize_fn_pallas(x_small, w_bit))
        assert out.shape == x_small.shape and out.dtype == x_small.dtype
        assert jnp.allclose(out, ref, atol=1e-5, rtol=1e-5)
        for path in ("fused", "tiled"):      # exercise both Pallas code paths
            out = jax.block_until_ready(
                weight_quantize_fn_pallas(x_small, w_bit, force_path=path))
            assert out.shape == x_small.shape and out.dtype == x_small.dtype
            assert jnp.allclose(out, ref, atol=1e-5, rtol=1e-5), (
                f"mismatch at w_bit={w_bit}, path={path}")

    # --- larger conv weight: exercises the multi-block + ragged-masking tiled
    #     path (rows=3200 -> 2 blocks of 2048 rows, last one ragged) -----------
    x_big = jax.random.normal(jax.random.fold_in(key, 1),
                              (256, 64, 5, 5), dtype=jnp.float32) * 0.5
    for w_bit in (4, 32):
        ref = _reference_jax(x_big, w_bit)
        for path in ("fused", "tiled"):
            out = jax.block_until_ready(
                weight_quantize_fn_pallas(x_big, w_bit, force_path=path))
            assert out.shape == x_big.shape and out.dtype == x_big.dtype
            if w_bit == 32:
                assert jnp.allclose(out, ref, atol=1e-4, rtol=1e-4), (
                    f"mismatch at w_bit={w_bit}, path={path}")
            else:
                # Folded-scalar reassociation can flip a value sitting exactly on
                # a rounding tie by one quantization level; allow a handful.
                diff = jnp.abs(out.astype(jnp.float32) - ref.astype(jnp.float32))
                n_bad = int(jnp.sum(diff > 1e-3))
                assert n_bad <= 64, (
                    f"{n_bad} mismatches at w_bit={w_bit}, path={path}")

    print("KERNEL_OK")
</pallas_src>

<mosaic_0001>
module attributes {stable_mosaic.version = 11 : i64} {
  func.func @_fused_kernel(%arg0: memref<3x128xf32, #tpu.memory_space<vmem>>, %arg1: memref<3x128xf32, #tpu.memory_space<vmem>>) attributes {dimension_semantics = [], scalar_prefetch = 0 : i64, scratch_operands = 0 : i64, tpu.core_type = #tpu.core_type<tc>} {
    %c0 = arith.constant 0 : index
    %c0_0 = arith.constant 0 : index
    %0 = vector.load %arg0[%c0, %c0_0] : memref<3x128xf32, #tpu.memory_space<vmem>>, vector<3x128xf32>
    %1 = math.absf %0 : vector<3x128xf32>
    %2 = vector.shape_cast %1 : vector<3x128xf32> to vector<1x3x128xf32>
    %cst = arith.constant dense<0.000000e+00> : vector<1xf32>
    %3 = vector.multi_reduction <add>, %2, %cst [1, 2] : vector<1x3x128xf32> to vector<1xf32>
    %4 = vector.shape_cast %3 : vector<1xf32> to vector<1x1x1xf32>
    %5 = vector.extract %4[0, 0, 0] : f32 from vector<1x1x1xf32>
    %cst_1 = arith.constant 0.00347222225 : f32
    %6 = arith.mulf %5, %cst_1 : f32
    %7 = vector.broadcast %6 : f32 to vector<1x1xf32>
    %8 = vector.shape_cast %1 : vector<3x128xf32> to vector<1x3x128xf32>
    %cst_2 = arith.constant dense<0xFF800000> : vector<1xf32>
    %9 = vector.multi_reduction <maximumf>, %8, %cst_2 [1, 2] : vector<1x3x128xf32> to vector<1xf32>
    %10 = vector.shape_cast %9 : vector<1xf32> to vector<1x1x1xf32>
    %11 = vector.extract %10[0, 0, 0] : f32 from vector<1x1x1xf32>
    %12 = math.tanh %11 : f32
    %13 = vector.broadcast %12 : f32 to vector<1x1xf32>
    %14 = math.tanh %0 : vector<3x128xf32>
    %cst_3 = arith.constant 2.000000e+00 : f32
    %15 = vector.broadcast %cst_3 : f32 to vector<1x1xf32>
    %16 = arith.mulf %15, %13 : vector<1x1xf32>
    %cst_4 = arith.constant 1.500000e+01 : f32
    %17 = vector.broadcast %cst_4 : f32 to vector<1x1xf32>
    %18 = arith.divf %17, %16 : vector<1x1xf32>
    %cst_5 = arith.constant 0.13333334 : f32
    %19 = vector.broadcast %cst_5 : f32 to vector<1x1xf32>
    %20 = arith.mulf %19, %7 : vector<1x1xf32>
    %21 = vector.broadcast %18 : vector<1x1xf32> to vector<3x128xf32>
    %22 = arith.mulf %14, %21 : vector<3x128xf32>
    %cst_6 = arith.constant 7.500000e+00 : f32
    %23 = vector.broadcast %cst_6 : f32 to vector<3x128xf32>
    %24 = arith.addf %22, %23 : vector<3x128xf32>
    %25 = math.roundeven %24 : vector<3x128xf32>
    %26 = vector.broadcast %20 : vector<1x1xf32> to vector<3x128xf32>
    %27 = arith.mulf %25, %26 : vector<3x128xf32>
    %28 = vector.broadcast %7 : vector<1x1xf32> to vector<3x128xf32>
    %29 = arith.subf %27, %28 : vector<3x128xf32>
    %c0_7 = arith.constant 0 : index
    %c0_8 = arith.constant 0 : index
    %30 = vector.load %arg1[%c0_7, %c0_8] : memref<3x128xf32, #tpu.memory_space<vmem>>, vector<3x128xf32>
    tpu.vector_store %arg1[%c0_7, %c0_8], %29 {strides = array<i32>} : memref<3x128xf32, #tpu.memory_space<vmem>>, vector<3x128xf32>,
    return
  }
}

</mosaic_0001>

<bundles_post_ra>
// kernel: tpu_custom_call.1
= control target key start
LH: loop header
LB: loop body
LE: loop exit
PB: predicated region body
PF: predicated region fallthrough
CT: control target
= control target key end

     0   :  { %6 = vsyncpa [#allocation3], 0  ;;  %s175_s0 = inlined_call_operand.hbm [shape: f32[3,128], index: 0, kind: input, shape index: {}]   ;;  %s176_s1 = inlined_call_operand.hbm [shape: f32[3,128], index: 1, kind: output, shape index: {}]  }
   0x1   :  { %7 = vsyncpa [#allocation4], 0  ;;  %s139_s6 = smov [#allocation2]   ;;  %s91_s10 = scalar_lea.hbm %s175_s0, 64 }
   0x2   :  { %s14_s7 = sshll.u32 %s139_s6, 4  ;;  %p92_p0 = scmp.ne.s32.totalorder %s175_s0, %s91_s10  ;;  %s15_s7 = int_to_ptr.vmem [resolvable:$true] %s14_s7 }
   0x3   :  { %p95_p1 = scmp.lt.u32.totalorder %s91_s10, %s175_s0 }
   0x5   :  { %p97_p2 = pnand %p95_p1, %p92_p0 }
   0x7   :  { %100 = shalt.err (!%p97_p2)
}
   0x8   :  { %s101_s15 = scalar_lea.vmem %s15_s7, 64  ;;  %p106_p4 = scmp.lt.s32.totalorder %s15_s7, %s15_s7 }
   0x9   :  { %p102_p3 = scmp.ne.s32.totalorder %s15_s7, %s101_s15  ;;  %p107_p5 = scmp.lt.s32.totalorder %s101_s15, %s101_s15 }
   0xb   :  { %p108_p6 = por %p107_p5, %p106_p4 }
   0xd   :  { %p109_p7 = pnand %p108_p6, %p102_p3 }
   0xf   :  { %112 = shalt.err (!%p109_p7)
}
  0x10   :  { %17 = dma.hbm_to_vmem [thread:$0]  %s175_s0, 64, %s15_s7, [#allocation3]  }
  0x11   :  { %135 = dma.done.wait [#allocation3], 64  }
  0x12   :  { %136 = vsyncadd [#allocation3], 4294967232  ;;  %v21_v0 = vld [vmem:[#allocation2] sm:$0x7]  ;;  %vm23_vm0 = vcmask 1042432   ;;  %s140_s21 = smov [#allocation5]  }
  0x13   :  { %v22_v1 = vand.u32 2147483647, %v21_v0  ;;  %s67_s22 = sshll.u32 %s140_s21, 4  ;;  %s68_s22 = int_to_ptr.vmem [resolvable:$true] %s67_s22 }
  0x14   :  { %s113_s23 = scalar_lea.vmem %s68_s22, 64  ;;  %p118_p9 = scmp.lt.s32.totalorder %s68_s22, %s68_s22 }
  0x15   :  { %v24_v2 = vsel %vm23_vm0, %v22_v1, 0.0  ;;  %v36_v3 = vsel %vm23_vm0, %v22_v1, -inf  ;;  %p114_p8 = scmp.ne.s32.totalorder %s68_s22, %s113_s23  ;;  %p119_p10 = scmp.lt.s32.totalorder %s113_s23, %s113_s23 }
  0x16   :  { %25 = vadd.xlane.f32.xlu0 %v24_v2 }
  0x17   :  { %p120_p11 = por %p119_p10, %p118_p9 }
  0x19   :  { %p121_p12 = pnand %p120_p11, %p114_p8 }
  0x1a   :  { %37 = vmax.xlane.f32.xlu0 %v36_v3 }
  0xa3   :  { %v26_v4 = vpop.xlane.xlu0 %25 }
  0xa4   :  { %v27_v5 = vrot.slane %v26_v4, 4 }
  0xa6   :  { %v28_v6 = vadd.f32 %v27_v5, %v26_v4 }
  0xa7   :  { %v38_v7 = vpop.xlane.xlu0 %37 }
  0xa8   :  { %v29_v8 = vrot.slane %v28_v6, 2  ;;  %v39_v9 = vrot.slane %v38_v7, 4 }
  0xaa   :  { %v40_v10 = vmax.f32 %v38_v7, %v39_v9  ;;  %v30_v11 = vadd.f32 %v29_v8, %v28_v6 }
  0xac   :  { %v41_v12 = vrot.slane %v40_v10, 2  ;;  %v31_v13 = vrot.slane %v30_v11, 1 }
  0xae   :  { %v42_v14 = vmax.f32 %v40_v10, %v41_v12  ;;  %v32_v15 = vadd.f32 %v31_v13, %v30_v11 }
  0xb0   :  { %76 = vpush %v32_v15  ;;  %v43_v16 = vrot.slane %v42_v14, 1 }
  0xb2   :  { %v44_v17 = vmax.f32 %v42_v14, %v43_v16 }
  0xb4   :  { %78 = vpush %v44_v17 }
  0xe1   :  { %s77_s0 = spop %76 }
  0xe2   :  { %s34_s20 = smul.f32 0.0034722222, %s77_s0 }
  0xe4   :  { %v35_v26 = vstv %s34_s20 }
  0xe5   :  { %s79_s18 = spop %78  ;;  %v54_v28 = vmul.f32 0.13333334, %v35_v26 }
  0xe6   :  { %v46_v18 = vstv %s79_s18 }
  0xe7   :  { %85 = vtanh.f32 %v46_v18 }
  0xe8   :  { %87 = vtanh.f32 %v21_v0 }
  0xf1   :  { %v86_v19 = vpop.eup %85 }
  0xf2   :  { %80 = vpush %v86_v19  ;;  %v88_v22 = vpop.eup %87 }
 0x123   :  { %s81_s19 = spop %80 }
 0x124   :  { %v49_v20 = vstv %s81_s19 }
 0x125   :  { %v51_v21 = vmul.f32 2.0, %v49_v20 }
 0x127   :  { %89 = vrcp.f32 %v51_v21 }
 0x131   :  { %v90_v23 = vpop.eup %89 }
 0x132   :  { %v53_v24 = vmul.f32 15.0, %v90_v23 }
 0x134   :  { %v55_v25 = vmul.f32 %v88_v22, %v53_v24 }
 0x136   :  { %v56_v27 = vadd.f32 7.5, %v55_v25 }
 0x138   :  { %v82_v29 = vround.rtne.f32 %v56_v27 }
 0x13a   :  { %v58_v30 = vmul.f32 %v82_v29, %v54_v28 }
 0x13c   :  { %v59_v31 = vsub.f32 %v58_v30, %v35_v26 }
 0x13e   :  { %60 = vst [vmem:[#allocation5] sm:$0x7] %v59_v31 }
 0x13f   :  { %124 = shalt.err (!%p121_p12)
}
 0x140   :  { %s125_s26 = scalar_lea.hbm %s176_s1, 64 }
 0x141   :  { %p126_p13 = scmp.ne.s32.totalorder %s176_s1, %s125_s26  ;;  %p129_p0 = scmp.lt.u32.totalorder %s125_s26, %s176_s1 }
 0x143   :  { %p131_p1 = pnand %p129_p0, %p126_p13 }
 0x145   :  { %134 = shalt.err (!%p131_p1)
}
 0x146   :  { %70 = dma.vmem_to_hbm [thread:$0]  %s68_s22, 64, %s176_s1, [#allocation4]  }
 0x147   :  { %137 = dma.done.wait [#allocation4], 64  }
 0x148   :  { %138 = vsyncadd [#allocation4], 4294967232 }
 0x149   :  { %74 = vsyncpa [#allocation3], 1 }
 0x14a   :  { %75 = vsyncpa [#allocation4], 1 }

</bundles_post_ra>
